<compile_context>
chip_gen: v7x
topology: tpu7x:2x2x1
jax: 0.10.0
libtpu: 0.0.40
codegen_flags: <defaults>
</compile_context>

<pallas_src>
import math

import jax
import jax.numpy as jnp
from jax.experimental import pallas as pl
from jax.experimental.pallas import tpu as pltpu


def _bg_broadcast_kernel(pattern_ref, out_ref):
    # pattern_ref: (1, L) VMEM tile, resident across the whole grid
    #              (constant block index -> no per-step DMA).
    # out_ref:     (tile_rows, L) output tile; sublane-broadcast the lane
    #              pattern and store full-width. Out-of-bounds rows of the
    #              partial last block are discarded by Pallas.
    out_ref[...] = jnp.broadcast_to(pattern_ref[...], out_ref.shape)


def background_field_forward(x, bg_color, *, max_tile_rows=4096, min_blocks=2):
    """Pallas implementation of BackgroundField.forward.

    x:         any array with shape (*leading, C_in); only its shape matters.
    bg_color:  (out_dim,) parameter.
    returns:   (*leading, out_dim) array of dtype bg_color.dtype.
    """
    out_dim = bg_color.shape[0]
    leading = x.shape[:-1]
    n = 1
    for d in leading:
        n *= d
    total = n * out_dim  # total number of output elements

    if total == 0:
        # Degenerate empty output: nothing for a kernel to do.
        return jnp.broadcast_to(bg_color, (*leading, out_dim))

    dtype = bg_color.dtype
    itemsize = jnp.dtype(dtype).itemsize

    # Lane-dense last dim: multiple of 128 (lane width) AND of out_dim so the
    # repeating color pattern tiles the lane axis exactly and row boundaries
    # align with the color period (out_dim=3 -> L=384).
    L = (128 * out_dim) // math.gcd(128, out_dim)
    rows = -(-total // L)  # ceil: rows needed to hold all output elements

    # Packed-sublane minimum for the block's second-to-last dim:
    # f32 -> 8, bf16 -> 16, int8/fp8 -> 32.
    sub = max(8, 32 // max(1, itemsize))

    if rows <= sub:
        # Tiny output: single full-extent block ((8,128) rule doesn't apply
        # when the block equals the array extent).
        tile_rows = rows
        grid_rows = 1
    else:
        # Multi-block path. Cap tile at max_tile_rows (sublane-aligned) but
        # also aim for at least `min_blocks` blocks so v7x's two TensorCores
        # both get work on medium-size outputs.
        cap = max(sub, (max_tile_rows // sub) * sub)
        target = -(-rows // max(1, min_blocks))      # ceil(rows / min_blocks)
        target = max(sub, -(-target // sub) * sub)   # round up to sublane mult
        tile_rows = min(cap, target)
        grid_rows = -(-rows // tile_rows)            # partial last block is OK

    # Pre-tile the color pattern once on the wrapper side: shape (1, L).
    # Since L % out_dim == 0, flattening (rows, L) row-major yields the exact
    # repeating sequence [c0, c1, ..., c_{out_dim-1}, c0, ...].
    # (If this is called repeatedly with the same parameter, hoist this tile
    #  out and precompute it once per parameter update.)
    pattern = jnp.tile(bg_color, L // out_dim).reshape(1, L)

    # Raise the scoped-VMEM limit only if the requested tiles need it
    # (default 4096-row f32 tiles fit every generation's default).
    out_buf_bytes = tile_rows * L * itemsize
    vmem_needed = 2 * out_buf_bytes + 2 * L * itemsize  # dbl-buffered out + pattern
    cp_kwargs = dict(dimension_semantics=("parallel",))
    if vmem_needed > (14 << 20):
        cp_kwargs["vmem_limit_bytes"] = int(min(vmem_needed + (2 << 20), 56 << 20))

    flat = pl.pallas_call(
        _bg_broadcast_kernel,
        out_shape=jax.ShapeDtypeStruct((rows, L), dtype),
        grid_spec=pltpu.PrefetchScalarGridSpec(
            num_scalar_prefetch=0,
            grid=(grid_rows,),
            in_specs=[pl.BlockSpec((1, L), lambda i: (0, 0))],
            out_specs=pl.BlockSpec((tile_rows, L), lambda i: (i, 0)),
        ),
        compiler_params=pltpu.CompilerParams(**cp_kwargs),
    )(pattern)

    flat = flat.reshape(-1)
    if rows * L != total:
        # Only on non-128-aligned pixel counts; over-allocation is < L elems.
        flat = flat[:total]
    return flat.reshape(*leading, out_dim)


def make_background_field_params(out_dim=3, bg_color='1.0,1.0,1.0', min_color=-1):
    """Deterministic parameter init mirroring BackgroundField.__init__."""
    if out_dim == 3:
        colors = [float(b) for b in bg_color.split(',')] if isinstance(bg_color, str) else [bg_color]
        if min_color == -1:
            colors = [b * 2 - 1 for b in colors]
        if len(colors) == 1:
            colors = colors * 3
        return jnp.asarray(colors, dtype=jnp.float32)
    else:
        # TODO(synk): torch .uniform_() replaced by deterministic jax.random uniform
        c = jax.random.uniform(jax.random.PRNGKey(0), (out_dim,), dtype=jnp.float32)
        if min_color == -1:
            c = c * 2 - 1
        return c


if __name__ == "__main__":
    key = jax.random.PRNGKey(0)
    bg_color = make_background_field_params(out_dim=3, bg_color='1.0,1.0,1.0', min_color=-1)

    # --- primary small test: shape (*leading, C_in); values unused ---------
    B, H, W, C_in = 2, 4, 16, 16
    x = jax.random.normal(key, (B, H, W, C_in), dtype=jnp.float32)
    out = background_field_forward(x, bg_color)
    out = jax.block_until_ready(out)
    ref = jnp.broadcast_to(bg_color, (B, H, W, 3))
    assert out.shape == (B, H, W, 3), out.shape
    assert out.dtype == bg_color.dtype
    assert bool(jnp.allclose(out, ref)), "mismatch vs reference broadcast"

    # --- multi-block path (grid > 1, parallel axis) at small size ----------
    x2 = jax.random.normal(key, (4, 64, 96, 8), dtype=jnp.float32)
    out2 = background_field_forward(x2, bg_color, max_tile_rows=64)
    out2 = jax.block_until_ready(out2)
    ref2 = jnp.broadcast_to(bg_color, (4, 64, 96, 3))
    assert out2.shape == (4, 64, 96, 3)
    assert bool(jnp.allclose(out2, ref2)), "mismatch (multi-block path)"

    # --- non-divisible path (total not a multiple of L, minimal slice) -----
    x3 = jax.random.normal(key, (2, 50, 7), dtype=jnp.float32)  # n=100, total=300 < L=384
    out3 = background_field_forward(x3, bg_color)
    out3 = jax.block_until_ready(out3)
    ref3 = jnp.broadcast_to(bg_color, (2, 50, 3))
    assert out3.shape == (2, 50, 3)
    assert bool(jnp.allclose(out3, ref3)), "mismatch (non-divisible path)"

    # --- partial last block (rows not a multiple of tile_rows, no slice) ---
    x4 = jax.random.normal(key, (9, 128, 4), dtype=jnp.float32)  # rows=9 -> tile=8, grid=2
    out4 = background_field_forward(x4, bg_color)
    out4 = jax.block_until_ready(out4)
    ref4 = jnp.broadcast_to(bg_color, (9, 128, 3))
    assert out4.shape == (9, 128, 3)
    assert bool(jnp.allclose(out4, ref4)), "mismatch (partial last block)"

    # --- bf16 parameter: sublane-packing-aware tile (multiple of 16) -------
    bg_bf16 = bg_color.astype(jnp.bfloat16)
    x5 = jax.random.normal(key, (32, 128, 4), dtype=jnp.float32)  # rows=32 -> tile=16, grid=2
    out5 = background_field_forward(x5, bg_bf16)
    out5 = jax.block_until_ready(out5)
    ref5 = jnp.broadcast_to(bg_bf16, (32, 128, 3))
    assert out5.shape == (32, 128, 3) and out5.dtype == jnp.bfloat16
    assert bool(jnp.allclose(out5.astype(jnp.float32), ref5.astype(jnp.float32))), "mismatch (bf16)"

    # --- empty input guard --------------------------------------------------
    x6 = jnp.zeros((0, 5, 4), dtype=jnp.float32)
    out6 = background_field_forward(x6, bg_color)
    out6 = jax.block_until_ready(out6)
    assert out6.shape == (0, 5, 3)

    print("KERNEL_OK")
</pallas_src>

<mosaic_0001>
module attributes {stable_mosaic.version = 11 : i64} {
  func.func @_bg_broadcast_kernel(%arg0: i32, %arg1: memref<1x384xf32, #tpu.memory_space<vmem>>, %arg2: memref<1x384xf32, #tpu.memory_space<vmem>>) attributes {dimension_semantics = [#tpu.dimension_semantics<parallel>], iteration_bounds = array<i64: 1>, scalar_prefetch = 0 : i64, scratch_operands = 0 : i64, tpu.core_type = #tpu.core_type<tc>, window_params = [{pipeline_mode = #tpu.pipeline_mode<synchronous>, transform_indices = @transform_0, window_bounds = array<i64: 1, 384>}, {transform_indices = @transform_1, window_bounds = array<i64: 1, 384>}]} {
    %c0 = arith.constant 0 : index
    %c0_0 = arith.constant 0 : index
    %0 = vector.load %arg1[%c0, %c0_0] : memref<1x384xf32, #tpu.memory_space<vmem>>, vector<1x384xf32>
    %c0_1 = arith.constant 0 : index
    %c0_2 = arith.constant 0 : index
    %1 = vector.load %arg2[%c0_1, %c0_2] : memref<1x384xf32, #tpu.memory_space<vmem>>, vector<1x384xf32>
    tpu.vector_store %arg2[%c0_1, %c0_2], %0 {strides = array<i32>} : memref<1x384xf32, #tpu.memory_space<vmem>>, vector<1x384xf32>,
    return
  }
  func.func @transform_0(%arg0: i32) -> (i32, i32) {
    %c0_i32 = arith.constant 0 : i32
    %c0_i32_0 = arith.constant 0 : i32
    %c0_i32_1 = arith.constant 0 : i32
    return %c0_i32, %c0_i32_0 : i32, i32
  }
  func.func @transform_1(%arg0: i32) -> (i32, i32) {
    %c0_i32 = arith.constant 0 : i32
    %c0_i32_0 = arith.constant 0 : i32
    return %arg0, %c0_i32 : i32, i32
  }
}

</mosaic_0001>

<bundles_post_ra>
// kernel: tpu_custom_call.1
= control target key start
LH: loop header
LB: loop body
LE: loop exit
PB: predicated region body
PF: predicated region fallthrough
CT: control target
= control target key end

     0   :  { %6 = vsyncpa [#allocation3], 0  ;;  %s128_s0 = inlined_call_operand.hbm [shape: f32[1,384], index: 0, kind: input, shape index: {}]   ;;  %s129_s1 = inlined_call_operand.hbm [shape: f32[1,384], index: 1, kind: output, shape index: {}]  }
   0x1   :  { %7 = vsyncpa [#allocation4], 0  ;;  %s92_s6 = smov [#allocation2]   ;;  %s44_s10 = scalar_lea.hbm %s128_s0, 48 }
   0x2   :  { %s14_s7 = sshll.u32 %s92_s6, 4  ;;  %p45_p0 = scmp.ne.s32.totalorder %s128_s0, %s44_s10  ;;  %s15_s7 = int_to_ptr.vmem [resolvable:$true] %s14_s7 }
   0x3   :  { %p48_p1 = scmp.lt.u32.totalorder %s44_s10, %s128_s0 }
   0x5   :  { %p50_p2 = pnand %p48_p1, %p45_p0 }
   0x7   :  { %53 = shalt.err (!%p50_p2)
}
   0x8   :  { %s54_s15 = scalar_lea.vmem %s15_s7, 48  ;;  %s58_s16 = scalar_lea.vmem %s15_s7, 64 }
   0x9   :  { %p55_p3 = scmp.ne.s32.totalorder %s15_s7, %s54_s15  ;;  %p59_p4 = scmp.lt.s32.totalorder %s15_s7, %s15_s7 }
   0xa   :  { %p60_p5 = scmp.lt.s32.totalorder %s58_s16, %s54_s15 }
   0xc   :  { %p61_p6 = por %p60_p5, %p59_p4 }
   0xe   :  { %p62_p7 = pnand %p61_p6, %p55_p3 }
  0x10   :  { %65 = shalt.err (!%p62_p7)
}
  0x11   :  { %17 = dma.hbm_to_vmem [thread:$0]  %s128_s0, 48, %s15_s7, [#allocation3]  }
  0x12   :  { %88 = dma.done.wait [#allocation3], 48  }
  0x13   :  { %89 = vsyncadd [#allocation3], 4294967248  ;;  %v22_v0 = vlaneseq  ;;  %s93_s19 = smov [#allocation5]   ;;  %v21_v1 = vld [vmem:[#allocation2] sm:$0x7] }
  0x14   :  { %s33_s20 = sshll.u32 %s93_s19, 4  ;;  %s34_s20 = int_to_ptr.vmem [resolvable:$true] %s33_s20 }
  0x15   :  { %vm24_vm0 = vcmp.lt.s32.totalorder %v22_v0, 384  ;;  %s66_s21 = scalar_lea.vmem %s34_s20, 48  ;;  %s70_s22 = scalar_lea.vmem %s34_s20, 64 }
  0x16   :  { %26 = vst.msk [vmem:[#allocation5] sm:$0x7] %vm24_vm0, %v21_v1  ;;  %p67_p8 = scmp.ne.s32.totalorder %s34_s20, %s66_s21  ;;  %p71_p9 = scmp.lt.s32.totalorder %s34_s20, %s34_s20 }
  0x17   :  { %p72_p10 = scmp.lt.s32.totalorder %s70_s22, %s66_s21 }
  0x19   :  { %p73_p11 = por %p72_p10, %p71_p9 }
  0x1b   :  { %p74_p12 = pnand %p73_p11, %p67_p8 }
  0x1d   :  { %77 = shalt.err (!%p74_p12)
}
  0x1e   :  { %s78_s0 = scalar_lea.hbm %s129_s1, 48 }
  0x1f   :  { %p79_p13 = scmp.ne.s32.totalorder %s129_s1, %s78_s0  ;;  %p82_p0 = scmp.lt.u32.totalorder %s78_s0, %s129_s1 }
  0x21   :  { %p84_p1 = pnand %p82_p0, %p79_p13 }
  0x23   :  { %87 = shalt.err (!%p84_p1)
}
  0x24   :  { %36 = dma.vmem_to_hbm [thread:$0]  %s34_s20, 48, %s129_s1, [#allocation4]  }
  0x25   :  { %90 = dma.done.wait [#allocation4], 48  }
  0x26   :  { %91 = vsyncadd [#allocation4], 4294967248 }
  0x27   :  { %40 = vsyncpa [#allocation3], 1 }
  0x28   :  { %41 = vsyncpa [#allocation4], 1 }

</bundles_post_ra>
